<compile_context>
chip_gen: v5e
topology: v5e:2x2
jax: 0.10.0
libtpu: 0.0.40
codegen_flags: <defaults>
</compile_context>

<pallas_src>
import functools

import jax
import jax.numpy as jnp
from jax.experimental import pallas as pl

# ----------------------------- config -----------------------------------
T, B = 8, 8                  # time steps, batch (B=8 -> sublane-dense slabs)
N_IN, N_HID, N_OUT = 16, 32, 8
ALPHA = 0.2                  # CTRNN leak

HP = dict(
    loss_type="lsq",         # -> MSELoss
    spatial_weight=0.0,      # -> spatial_loss is None, loss_space == 0
    l1_h=1e-4, l2_h=1e-5,
    l1_weight=1e-4, l2_weight=1e-5,
)


# -------------------- fused RNN forward + loss kernel --------------------
def _fused_forward(x, y, c_mask, params, *, alpha=ALPHA, hp=HP):
    """One pallas_call: CTRNN recurrence + output projection + MSE + reg."""
    w_in, w_rec, b_rec, w_out, b_out = params
    t_, b_, n_in = x.shape
    n_hid = w_rec.shape[0]
    n_out = w_out.shape[1]
    tb = t_ * b_

    # Time-major 2-D slabs (row = t*B + b): lane-denser I/O, single DMA each.
    x2 = x.reshape(tb, n_in)
    y2 = y.reshape(tb, n_out)
    m2 = c_mask.reshape(tb, n_out)
    # Pack the two bias rows into one input (halves the tiny-array DMA count).
    b_cat = jnp.concatenate([b_rec, b_out], axis=1)          # (1, NH+NO)

    def kernel(x_ref, y_ref, m_ref, w_in_ref, w_rec_ref, w_out_ref, b_ref,
               slab_ref, scal_ref):
        w_in_v = w_in_ref[...]
        w_rec_v = w_rec_ref[...]
        w_out_v = w_out_ref[...]
        b_all = b_ref[...]                                   # (1, NH+NO)
        b_rec_v = b_all[:, :n_hid]
        b_out_v = b_all[:, n_hid:]

        # ---- input projection hoisted off the serial chain: ONE batched
        # matmul + ONE broadcast of b_rec (JAX does not CSE broadcasts in an
        # unrolled loop, so this also removes 8 redundant broadcast_in_dim).
        xin_all = (jnp.dot(x_ref[...], w_in_v,
                           preferred_element_type=jnp.float32) + b_rec_v)

        # ---- recurrence: fully unrolled (T static), register-carried.
        # Only h @ W_rec remains on the serial MXU chain.
        h = jnp.zeros((b_, n_hid), jnp.float32)
        hs = []
        for t in range(t_):
            pre = xin_all[t * b_:(t + 1) * b_, :] + jnp.dot(
                h, w_rec_v, preferred_element_type=jnp.float32)
            h = (1.0 - alpha) * h + alpha * jnp.maximum(pre, 0.0)
            hs.append(h)
        hidden_all = jnp.concatenate(hs, axis=0)             # (T*B, NH)

        # ---- output projection off the serial path: one batched matmul.
        out = (jnp.dot(hidden_all, w_out_v,
                       preferred_element_type=jnp.float32) + b_out_v)

        # ---- single combined writeback: [hidden | output] slab, one store.
        slab_ref[...] = jnp.concatenate([hidden_all, out], axis=1)

        # ---- fused loss: MSE(c_mask*out, c_mask*y) == mean((c_mask*(out-y))^2)
        diff = m_ref[...] * (out - y_ref[...])
        loss = jnp.sum(diff * diff) * (1.0 / diff.size)

        # ---- regularization: hidden activity + parameters (per-parameter
        # means, exactly as the PyTorch loop over self.parameters()).
        def l1l2(v, l1, l2):
            return (jnp.sum(jnp.abs(v)) * (l1 / v.size)      # mean|v| * l1
                    + jnp.sqrt(jnp.sum(v * v)) * l2)         # ||v||_F * l2

        reg = l1l2(hidden_all, hp["l1_h"], hp["l2_h"])
        for p in (w_in_v, w_rec_v, b_rec_v, w_out_v, b_out_v):
            reg = reg + l1l2(p, hp["l1_weight"], hp["l2_weight"])

        # ---- both scalars in one (1,2) output block, one vector store.
        lane = jax.lax.broadcasted_iota(jnp.int32, (1, 2), 1)
        scal_ref[...] = jnp.where(lane == 0, loss, reg)
        # TODO(synk): NaN guard (raise ValueError) from the reference is not
        # expressible on-device; caller can check jnp.isfinite on the outputs.

    slab, scal = pl.pallas_call(
        kernel,
        out_shape=(
            jax.ShapeDtypeStruct((tb, n_hid + n_out), jnp.float32),  # [h | out]
            jax.ShapeDtypeStruct((1, 2), jnp.float32),               # [loss, reg]
        ),
        # No grid: the whole problem (~25 KB) lives in VMEM for the single
        # invocation; each input/output moves with exactly one DMA.
        # For larger workloads: add a leading "parallel" trial/batch grid axis
        # (dimension_semantics) for v7x's 2 TCs, tile to 128/256 multiples,
        # set vmem_limit_bytes against v7x's 64 MiB, and consider bf16 MXU
        # operands on v6e/v7x (f32 accumulation + f32 VPU math).
    )(x2, y2, m2, w_in, w_rec, w_out, b_cat)

    hidden = slab[:, :n_hid].reshape(t_, b_, n_hid)
    output = slab[:, n_hid:].reshape(t_, b_, n_out)
    return output, hidden, scal[0, 0], scal[0, 1]


# --------------------------- wrapper forward ------------------------------
def generate_trials(key, batch_size):
    """Synthetic stand-in for gen_trials: returns (x, y, c_mask)."""
    kx, ky, km = jax.random.split(key, 3)
    x = jax.random.normal(kx, (T, batch_size, N_IN), jnp.float32)
    y = jax.random.normal(ky, (T, batch_size, N_OUT), jnp.float32)
    c_mask = (jax.random.uniform(km, (T, batch_size, N_OUT)) > 0.3
              ).astype(jnp.float32) * 2.0
    return x, y, c_mask


def init_params(key):
    k1, k2, k3 = jax.random.split(key, 3)
    w_in = jax.random.normal(k1, (N_IN, N_HID), jnp.float32) / jnp.sqrt(N_IN)
    w_rec = jax.random.normal(k2, (N_HID, N_HID), jnp.float32) / jnp.sqrt(N_HID)
    b_rec = jnp.zeros((1, N_HID), jnp.float32)
    w_out = jax.random.normal(k3, (N_HID, N_OUT), jnp.float32) / jnp.sqrt(N_HID)
    b_out = jnp.zeros((1, N_OUT), jnp.float32)
    return (w_in, w_rec, b_rec, w_out, b_out)


@functools.partial(jax.jit, static_argnames=("batch_size",))
def model_wrapper_forward(key, params, batch_size=B):
    trial_x, trial_y, c_mask = generate_trials(key, batch_size)
    output, hidden, loss, loss_reg = _fused_forward(trial_x, trial_y, c_mask,
                                                    params)
    loss_space = jnp.float32(0.0)   # spatial_weight == 0 -> no SpatialLoss
    # TODO(synk): SpatialLoss / accumulate_spatial_losses not implemented
    # (disabled by hp['spatial_weight'] == 0 in this configuration).
    return loss, loss_reg, loss_space, output, [hidden], (trial_x, trial_y, c_mask)


if __name__ == "__main__":
    key = jax.random.PRNGKey(0)
    k_param, k_trial = jax.random.split(key)
    params = init_params(k_param)

    loss, loss_reg, loss_space, output, hidden, trial = model_wrapper_forward(
        k_trial, params, batch_size=B)

    jax.block_until_ready((loss, loss_reg, loss_space, output, hidden[0]))

    assert output.shape == (T, B, N_OUT)
    assert hidden[0].shape == (T, B, N_HID)
    assert bool(jnp.isfinite(loss)) and bool(jnp.isfinite(loss_reg))
    print("KERNEL_OK")
</pallas_src>

<mosaic_0001>
module attributes {stable_mosaic.version = 11 : i64} {
  func.func @kernel(%arg0: memref<64x16xf32, #tpu.memory_space<vmem>>, %arg1: memref<64x8xf32, #tpu.memory_space<vmem>>, %arg2: memref<64x8xf32, #tpu.memory_space<vmem>>, %arg3: memref<16x32xf32, #tpu.memory_space<vmem>>, %arg4: memref<32x32xf32, #tpu.memory_space<vmem>>, %arg5: memref<32x8xf32, #tpu.memory_space<vmem>>, %arg6: memref<1x40xf32, #tpu.memory_space<vmem>>, %arg7: memref<64x40xf32, #tpu.memory_space<vmem>>, %arg8: memref<1x2xf32, #tpu.memory_space<vmem>>) attributes {dimension_semantics = [], scalar_prefetch = 0 : i64, scratch_operands = 0 : i64, tpu.core_type = #tpu.core_type<tc>} {
    %c0 = arith.constant 0 : index
    %c0_0 = arith.constant 0 : index
    %0 = vector.load %arg3[%c0, %c0_0] : memref<16x32xf32, #tpu.memory_space<vmem>>, vector<16x32xf32>
    %c0_1 = arith.constant 0 : index
    %c0_2 = arith.constant 0 : index
    %1 = vector.load %arg4[%c0_1, %c0_2] : memref<32x32xf32, #tpu.memory_space<vmem>>, vector<32x32xf32>
    %c0_3 = arith.constant 0 : index
    %c0_4 = arith.constant 0 : index
    %2 = vector.load %arg5[%c0_3, %c0_4] : memref<32x8xf32, #tpu.memory_space<vmem>>, vector<32x8xf32>
    %c0_5 = arith.constant 0 : index
    %c0_6 = arith.constant 0 : index
    %3 = vector.load %arg6[%c0_5, %c0_6] : memref<1x40xf32, #tpu.memory_space<vmem>>, vector<1x40xf32>
    %4 = vector.extract_strided_slice %3 {offsets = [0, 0], sizes = [1, 32], strides = [1, 1]} : vector<1x40xf32> to vector<1x32xf32>
    %5 = vector.extract_strided_slice %3 {offsets = [0, 32], sizes = [1, 8], strides = [1, 1]} : vector<1x40xf32> to vector<1x8xf32>
    %c0_7 = arith.constant 0 : index
    %c0_8 = arith.constant 0 : index
    %6 = vector.load %arg0[%c0_7, %c0_8] : memref<64x16xf32, #tpu.memory_space<vmem>>, vector<64x16xf32>
    %cst = arith.constant dense<0.000000e+00> : vector<64x32xf32>
    %7 = tpu.matmul %6, %0, %cst {dimension_numbers = #tpu.dot_dimension_numbers<[1], [0], [0], [1], [0, 0, 1, 1], [], []>} : vector<64x16xf32>, vector<16x32xf32>, vector<64x32xf32> -> vector<64x32xf32>
    %8 = vector.broadcast %4 : vector<1x32xf32> to vector<64x32xf32>
    %9 = arith.addf %7, %8 : vector<64x32xf32>
    %cst_9 = arith.constant 0.000000e+00 : f32
    %10 = vector.broadcast %cst_9 : f32 to vector<8x32xf32>
    %11 = vector.extract_strided_slice %9 {offsets = [0, 0], sizes = [8, 32], strides = [1, 1]} : vector<64x32xf32> to vector<8x32xf32>
    %cst_10 = arith.constant dense<0.000000e+00> : vector<8x32xf32>
    %12 = tpu.matmul %10, %1, %cst_10 {dimension_numbers = #tpu.dot_dimension_numbers<[1], [0], [0], [1], [0, 0, 1, 1], [], []>} : vector<8x32xf32>, vector<32x32xf32>, vector<8x32xf32> -> vector<8x32xf32>
    %13 = arith.addf %11, %12 : vector<8x32xf32>
    %cst_11 = arith.constant 8.000000e-01 : f32
    %14 = vector.broadcast %cst_11 : f32 to vector<8x32xf32>
    %15 = arith.mulf %14, %10 : vector<8x32xf32>
    %cst_12 = arith.constant 0.000000e+00 : f32
    %16 = vector.broadcast %cst_12 : f32 to vector<8x32xf32>
    %17 = arith.maximumf %13, %16 : vector<8x32xf32>
    %cst_13 = arith.constant 2.000000e-01 : f32
    %18 = vector.broadcast %cst_13 : f32 to vector<8x32xf32>
    %19 = arith.mulf %18, %17 : vector<8x32xf32>
    %20 = arith.addf %15, %19 : vector<8x32xf32>
    %21 = vector.extract_strided_slice %9 {offsets = [8, 0], sizes = [8, 32], strides = [1, 1]} : vector<64x32xf32> to vector<8x32xf32>
    %cst_14 = arith.constant dense<0.000000e+00> : vector<8x32xf32>
    %22 = tpu.matmul %20, %1, %cst_14 {dimension_numbers = #tpu.dot_dimension_numbers<[1], [0], [0], [1], [0, 0, 1, 1], [], []>} : vector<8x32xf32>, vector<32x32xf32>, vector<8x32xf32> -> vector<8x32xf32>
    %23 = arith.addf %21, %22 : vector<8x32xf32>
    %cst_15 = arith.constant 8.000000e-01 : f32
    %24 = vector.broadcast %cst_15 : f32 to vector<8x32xf32>
    %25 = arith.mulf %24, %20 : vector<8x32xf32>
    %cst_16 = arith.constant 0.000000e+00 : f32
    %26 = vector.broadcast %cst_16 : f32 to vector<8x32xf32>
    %27 = arith.maximumf %23, %26 : vector<8x32xf32>
    %cst_17 = arith.constant 2.000000e-01 : f32
    %28 = vector.broadcast %cst_17 : f32 to vector<8x32xf32>
    %29 = arith.mulf %28, %27 : vector<8x32xf32>
    %30 = arith.addf %25, %29 : vector<8x32xf32>
    %31 = vector.extract_strided_slice %9 {offsets = [16, 0], sizes = [8, 32], strides = [1, 1]} : vector<64x32xf32> to vector<8x32xf32>
    %cst_18 = arith.constant dense<0.000000e+00> : vector<8x32xf32>
    %32 = tpu.matmul %30, %1, %cst_18 {dimension_numbers = #tpu.dot_dimension_numbers<[1], [0], [0], [1], [0, 0, 1, 1], [], []>} : vector<8x32xf32>, vector<32x32xf32>, vector<8x32xf32> -> vector<8x32xf32>
    %33 = arith.addf %31, %32 : vector<8x32xf32>
    %cst_19 = arith.constant 8.000000e-01 : f32
    %34 = vector.broadcast %cst_19 : f32 to vector<8x32xf32>
    %35 = arith.mulf %34, %30 : vector<8x32xf32>
    %cst_20 = arith.constant 0.000000e+00 : f32
    %36 = vector.broadcast %cst_20 : f32 to vector<8x32xf32>
    %37 = arith.maximumf %33, %36 : vector<8x32xf32>
    %cst_21 = arith.constant 2.000000e-01 : f32
    %38 = vector.broadcast %cst_21 : f32 to vector<8x32xf32>
    %39 = arith.mulf %38, %37 : vector<8x32xf32>
    %40 = arith.addf %35, %39 : vector<8x32xf32>
    %41 = vector.extract_strided_slice %9 {offsets = [24, 0], sizes = [8, 32], strides = [1, 1]} : vector<64x32xf32> to vector<8x32xf32>
    %cst_22 = arith.constant dense<0.000000e+00> : vector<8x32xf32>
    %42 = tpu.matmul %40, %1, %cst_22 {dimension_numbers = #tpu.dot_dimension_numbers<[1], [0], [0], [1], [0, 0, 1, 1], [], []>} : vector<8x32xf32>, vector<32x32xf32>, vector<8x32xf32> -> vector<8x32xf32>
    %43 = arith.addf %41, %42 : vector<8x32xf32>
    %cst_23 = arith.constant 8.000000e-01 : f32
    %44 = vector.broadcast %cst_23 : f32 to vector<8x32xf32>
    %45 = arith.mulf %44, %40 : vector<8x32xf32>
    %cst_24 = arith.constant 0.000000e+00 : f32
    %46 = vector.broadcast %cst_24 : f32 to vector<8x32xf32>
    %47 = arith.maximumf %43, %46 : vector<8x32xf32>
    %cst_25 = arith.constant 2.000000e-01 : f32
    %48 = vector.broadcast %cst_25 : f32 to vector<8x32xf32>
    %49 = arith.mulf %48, %47 : vector<8x32xf32>
    %50 = arith.addf %45, %49 : vector<8x32xf32>
    %51 = vector.extract_strided_slice %9 {offsets = [32, 0], sizes = [8, 32], strides = [1, 1]} : vector<64x32xf32> to vector<8x32xf32>
    %cst_26 = arith.constant dense<0.000000e+00> : vector<8x32xf32>
    %52 = tpu.matmul %50, %1, %cst_26 {dimension_numbers = #tpu.dot_dimension_numbers<[1], [0], [0], [1], [0, 0, 1, 1], [], []>} : vector<8x32xf32>, vector<32x32xf32>, vector<8x32xf32> -> vector<8x32xf32>
    %53 = arith.addf %51, %52 : vector<8x32xf32>
    %cst_27 = arith.constant 8.000000e-01 : f32
    %54 = vector.broadcast %cst_27 : f32 to vector<8x32xf32>
    %55 = arith.mulf %54, %50 : vector<8x32xf32>
    %cst_28 = arith.constant 0.000000e+00 : f32
    %56 = vector.broadcast %cst_28 : f32 to vector<8x32xf32>
    %57 = arith.maximumf %53, %56 : vector<8x32xf32>
    %cst_29 = arith.constant 2.000000e-01 : f32
    %58 = vector.broadcast %cst_29 : f32 to vector<8x32xf32>
    %59 = arith.mulf %58, %57 : vector<8x32xf32>
    %60 = arith.addf %55, %59 : vector<8x32xf32>
    %61 = vector.extract_strided_slice %9 {offsets = [40, 0], sizes = [8, 32], strides = [1, 1]} : vector<64x32xf32> to vector<8x32xf32>
    %cst_30 = arith.constant dense<0.000000e+00> : vector<8x32xf32>
    %62 = tpu.matmul %60, %1, %cst_30 {dimension_numbers = #tpu.dot_dimension_numbers<[1], [0], [0], [1], [0, 0, 1, 1], [], []>} : vector<8x32xf32>, vector<32x32xf32>, vector<8x32xf32> -> vector<8x32xf32>
    %63 = arith.addf %61, %62 : vector<8x32xf32>
    %cst_31 = arith.constant 8.000000e-01 : f32
    %64 = vector.broadcast %cst_31 : f32 to vector<8x32xf32>
    %65 = arith.mulf %64, %60 : vector<8x32xf32>
    %cst_32 = arith.constant 0.000000e+00 : f32
    %66 = vector.broadcast %cst_32 : f32 to vector<8x32xf32>
    %67 = arith.maximumf %63, %66 : vector<8x32xf32>
    %cst_33 = arith.constant 2.000000e-01 : f32
    %68 = vector.broadcast %cst_33 : f32 to vector<8x32xf32>
    %69 = arith.mulf %68, %67 : vector<8x32xf32>
    %70 = arith.addf %65, %69 : vector<8x32xf32>
    %71 = vector.extract_strided_slice %9 {offsets = [48, 0], sizes = [8, 32], strides = [1, 1]} : vector<64x32xf32> to vector<8x32xf32>
    %cst_34 = arith.constant dense<0.000000e+00> : vector<8x32xf32>
    %72 = tpu.matmul %70, %1, %cst_34 {dimension_numbers = #tpu.dot_dimension_numbers<[1], [0], [0], [1], [0, 0, 1, 1], [], []>} : vector<8x32xf32>, vector<32x32xf32>, vector<8x32xf32> -> vector<8x32xf32>
    %73 = arith.addf %71, %72 : vector<8x32xf32>
    %cst_35 = arith.constant 8.000000e-01 : f32
    %74 = vector.broadcast %cst_35 : f32 to vector<8x32xf32>
    %75 = arith.mulf %74, %70 : vector<8x32xf32>
    %cst_36 = arith.constant 0.000000e+00 : f32
    %76 = vector.broadcast %cst_36 : f32 to vector<8x32xf32>
    %77 = arith.maximumf %73, %76 : vector<8x32xf32>
    %cst_37 = arith.constant 2.000000e-01 : f32
    %78 = vector.broadcast %cst_37 : f32 to vector<8x32xf32>
    %79 = arith.mulf %78, %77 : vector<8x32xf32>
    %80 = arith.addf %75, %79 : vector<8x32xf32>
    %81 = vector.extract_strided_slice %9 {offsets = [56, 0], sizes = [8, 32], strides = [1, 1]} : vector<64x32xf32> to vector<8x32xf32>
    %cst_38 = arith.constant dense<0.000000e+00> : vector<8x32xf32>
    %82 = tpu.matmul %80, %1, %cst_38 {dimension_numbers = #tpu.dot_dimension_numbers<[1], [0], [0], [1], [0, 0, 1, 1], [], []>} : vector<8x32xf32>, vector<32x32xf32>, vector<8x32xf32> -> vector<8x32xf32>
    %83 = arith.addf %81, %82 : vector<8x32xf32>
    %cst_39 = arith.constant 8.000000e-01 : f32
    %84 = vector.broadcast %cst_39 : f32 to vector<8x32xf32>
    %85 = arith.mulf %84, %80 : vector<8x32xf32>
    %cst_40 = arith.constant 0.000000e+00 : f32
    %86 = vector.broadcast %cst_40 : f32 to vector<8x32xf32>
    %87 = arith.maximumf %83, %86 : vector<8x32xf32>
    %cst_41 = arith.constant 2.000000e-01 : f32
    %88 = vector.broadcast %cst_41 : f32 to vector<8x32xf32>
    %89 = arith.mulf %88, %87 : vector<8x32xf32>
    %90 = arith.addf %85, %89 : vector<8x32xf32>
    %91 = tpu.concatenate %20, %30, %40, %50, %60, %70, %80, %90 in 0 : vector<8x32xf32>, vector<8x32xf32>, vector<8x32xf32>, vector<8x32xf32>, vector<8x32xf32>, vector<8x32xf32>, vector<8x32xf32>, vector<8x32xf32> -> vector<64x32xf32>
    %cst_42 = arith.constant dense<0.000000e+00> : vector<64x8xf32>
    %92 = tpu.matmul %91, %2, %cst_42 {dimension_numbers = #tpu.dot_dimension_numbers<[1], [0], [0], [1], [0, 0, 1, 1], [], []>} : vector<64x32xf32>, vector<32x8xf32>, vector<64x8xf32> -> vector<64x8xf32>
    %93 = vector.broadcast %5 : vector<1x8xf32> to vector<64x8xf32>
    %94 = arith.addf %92, %93 : vector<64x8xf32>
    %95 = tpu.concatenate %91, %94 in 1 : vector<64x32xf32>, vector<64x8xf32> -> vector<64x40xf32>
    %c0_43 = arith.constant 0 : index
    %c0_44 = arith.constant 0 : index
    %96 = vector.load %arg7[%c0_43, %c0_44] : memref<64x40xf32, #tpu.memory_space<vmem>>, vector<64x40xf32>
    tpu.vector_store %arg7[%c0_43, %c0_44], %95 {strides = array<i32>} : memref<64x40xf32, #tpu.memory_space<vmem>>, vector<64x40xf32>,
    %c0_45 = arith.constant 0 : index
    %c0_46 = arith.constant 0 : index
    %97 = vector.load %arg2[%c0_45, %c0_46] : memref<64x8xf32, #tpu.memory_space<vmem>>, vector<64x8xf32>
    %c0_47 = arith.constant 0 : index
    %c0_48 = arith.constant 0 : index
    %98 = vector.load %arg1[%c0_47, %c0_48] : memref<64x8xf32, #tpu.memory_space<vmem>>, vector<64x8xf32>
    %99 = arith.subf %94, %98 : vector<64x8xf32>
    %100 = arith.mulf %97, %99 : vector<64x8xf32>
    %101 = arith.mulf %100, %100 : vector<64x8xf32>
    %102 = vector.shape_cast %101 : vector<64x8xf32> to vector<1x64x8xf32>
    %cst_49 = arith.constant dense<0.000000e+00> : vector<1xf32>
    %103 = vector.multi_reduction <add>, %102, %cst_49 [1, 2] : vector<1x64x8xf32> to vector<1xf32>
    %104 = vector.shape_cast %103 : vector<1xf32> to vector<1x1x1xf32>
    %105 = vector.extract %104[0, 0, 0] : f32 from vector<1x1x1xf32>
    %cst_50 = arith.constant 0.001953125 : f32
    %106 = arith.mulf %105, %cst_50 : f32
    %107 = math.absf %91 : vector<64x32xf32>
    %108 = vector.shape_cast %107 : vector<64x32xf32> to vector<1x64x32xf32>
    %cst_51 = arith.constant dense<0.000000e+00> : vector<1xf32>
    %109 = vector.multi_reduction <add>, %108, %cst_51 [1, 2] : vector<1x64x32xf32> to vector<1xf32>
    %110 = vector.shape_cast %109 : vector<1xf32> to vector<1x1x1xf32>
    %111 = vector.extract %110[0, 0, 0] : f32 from vector<1x1x1xf32>
    %cst_52 = arith.constant 4.88281238E-8 : f32
    %112 = arith.mulf %111, %cst_52 : f32
    %113 = arith.mulf %91, %91 : vector<64x32xf32>
    %114 = vector.shape_cast %113 : vector<64x32xf32> to vector<1x64x32xf32>
    %cst_53 = arith.constant dense<0.000000e+00> : vector<1xf32>
    %115 = vector.multi_reduction <add>, %114, %cst_53 [1, 2] : vector<1x64x32xf32> to vector<1xf32>
    %116 = vector.shape_cast %115 : vector<1xf32> to vector<1x1x1xf32>
    %117 = vector.extract %116[0, 0, 0] : f32 from vector<1x1x1xf32>
    %118 = math.sqrt %117 : f32
    %cst_54 = arith.constant 9.99999974E-6 : f32
    %119 = arith.mulf %118, %cst_54 : f32
    %120 = arith.addf %112, %119 : f32
    %121 = math.absf %0 : vector<16x32xf32>
    %122 = vector.shape_cast %121 : vector<16x32xf32> to vector<1x16x32xf32>
    %cst_55 = arith.constant dense<0.000000e+00> : vector<1xf32>
    %123 = vector.multi_reduction <add>, %122, %cst_55 [1, 2] : vector<1x16x32xf32> to vector<1xf32>
    %124 = vector.shape_cast %123 : vector<1xf32> to vector<1x1x1xf32>
    %125 = vector.extract %124[0, 0, 0] : f32 from vector<1x1x1xf32>
    %cst_56 = arith.constant 1.95312495E-7 : f32
    %126 = arith.mulf %125, %cst_56 : f32
    %127 = arith.mulf %0, %0 : vector<16x32xf32>
    %128 = vector.shape_cast %127 : vector<16x32xf32> to vector<1x16x32xf32>
    %cst_57 = arith.constant dense<0.000000e+00> : vector<1xf32>
    %129 = vector.multi_reduction <add>, %128, %cst_57 [1, 2] : vector<1x16x32xf32> to vector<1xf32>
    %130 = vector.shape_cast %129 : vector<1xf32> to vector<1x1x1xf32>
    %131 = vector.extract %130[0, 0, 0] : f32 from vector<1x1x1xf32>
    %132 = math.sqrt %131 : f32
    %cst_58 = arith.constant 9.99999974E-6 : f32
    %133 = arith.mulf %132, %cst_58 : f32
    %134 = arith.addf %126, %133 : f32
    %135 = arith.addf %120, %134 : f32
    %136 = math.absf %1 : vector<32x32xf32>
    %137 = vector.shape_cast %136 : vector<32x32xf32> to vector<1x32x32xf32>
    %cst_59 = arith.constant dense<0.000000e+00> : vector<1xf32>
    %138 = vector.multi_reduction <add>, %137, %cst_59 [1, 2] : vector<1x32x32xf32> to vector<1xf32>
    %139 = vector.shape_cast %138 : vector<1xf32> to vector<1x1x1xf32>
    %140 = vector.extract %139[0, 0, 0] : f32 from vector<1x1x1xf32>
    %cst_60 = arith.constant 9.76562475E-8 : f32
    %141 = arith.mulf %140, %cst_60 : f32
    %142 = arith.mulf %1, %1 : vector<32x32xf32>
    %143 = vector.shape_cast %142 : vector<32x32xf32> to vector<1x32x32xf32>
    %cst_61 = arith.constant dense<0.000000e+00> : vector<1xf32>
    %144 = vector.multi_reduction <add>, %143, %cst_61 [1, 2] : vector<1x32x32xf32> to vector<1xf32>
    %145 = vector.shape_cast %144 : vector<1xf32> to vector<1x1x1xf32>
    %146 = vector.extract %145[0, 0, 0] : f32 from vector<1x1x1xf32>
    %147 = math.sqrt %146 : f32
    %cst_62 = arith.constant 9.99999974E-6 : f32
    %148 = arith.mulf %147, %cst_62 : f32
    %149 = arith.addf %141, %148 : f32
    %150 = arith.addf %135, %149 : f32
    %151 = math.absf %4 : vector<1x32xf32>
    %152 = vector.shape_cast %151 : vector<1x32xf32> to vector<1x1x32xf32>
    %cst_63 = arith.constant dense<0.000000e+00> : vector<1xf32>
    %153 = vector.multi_reduction <add>, %152, %cst_63 [1, 2] : vector<1x1x32xf32> to vector<1xf32>
    %154 = vector.shape_cast %153 : vector<1xf32> to vector<1x1x1xf32>
    %155 = vector.extract %154[0, 0, 0] : f32 from vector<1x1x1xf32>
    %cst_64 = arith.constant 3.125000e-06 : f32
    %156 = arith.mulf %155, %cst_64 : f32
    %157 = arith.mulf %4, %4 : vector<1x32xf32>
    %158 = vector.shape_cast %157 : vector<1x32xf32> to vector<1x1x32xf32>
    %cst_65 = arith.constant dense<0.000000e+00> : vector<1xf32>
    %159 = vector.multi_reduction <add>, %158, %cst_65 [1, 2] : vector<1x1x32xf32> to vector<1xf32>
    %160 = vector.shape_cast %159 : vector<1xf32> to vector<1x1x1xf32>
    %161 = vector.extract %160[0, 0, 0] : f32 from vector<1x1x1xf32>
    %162 = math.sqrt %161 : f32
    %cst_66 = arith.constant 9.99999974E-6 : f32
    %163 = arith.mulf %162, %cst_66 : f32
    %164 = arith.addf %156, %163 : f32
    %165 = arith.addf %150, %164 : f32
    %166 = math.absf %2 : vector<32x8xf32>
    %167 = vector.shape_cast %166 : vector<32x8xf32> to vector<1x32x8xf32>
    %cst_67 = arith.constant dense<0.000000e+00> : vector<1xf32>
    %168 = vector.multi_reduction <add>, %167, %cst_67 [1, 2] : vector<1x32x8xf32> to vector<1xf32>
    %169 = vector.shape_cast %168 : vector<1xf32> to vector<1x1x1xf32>
    %170 = vector.extract %169[0, 0, 0] : f32 from vector<1x1x1xf32>
    %cst_68 = arith.constant 3.906250e-07 : f32
    %171 = arith.mulf %170, %cst_68 : f32
    %172 = arith.mulf %2, %2 : vector<32x8xf32>
    %173 = vector.shape_cast %172 : vector<32x8xf32> to vector<1x32x8xf32>
    %cst_69 = arith.constant dense<0.000000e+00> : vector<1xf32>
    %174 = vector.multi_reduction <add>, %173, %cst_69 [1, 2] : vector<1x32x8xf32> to vector<1xf32>
    %175 = vector.shape_cast %174 : vector<1xf32> to vector<1x1x1xf32>
    %176 = vector.extract %175[0, 0, 0] : f32 from vector<1x1x1xf32>
    %177 = math.sqrt %176 : f32
    %cst_70 = arith.constant 9.99999974E-6 : f32
    %178 = arith.mulf %177, %cst_70 : f32
    %179 = arith.addf %171, %178 : f32
    %180 = arith.addf %165, %179 : f32
    %181 = math.absf %5 : vector<1x8xf32>
    %182 = vector.shape_cast %181 : vector<1x8xf32> to vector<1x1x8xf32>
    %cst_71 = arith.constant dense<0.000000e+00> : vector<1xf32>
    %183 = vector.multi_reduction <add>, %182, %cst_71 [1, 2] : vector<1x1x8xf32> to vector<1xf32>
    %184 = vector.shape_cast %183 : vector<1xf32> to vector<1x1x1xf32>
    %185 = vector.extract %184[0, 0, 0] : f32 from vector<1x1x1xf32>
    %cst_72 = arith.constant 1.250000e-05 : f32
    %186 = arith.mulf %185, %cst_72 : f32
    %187 = arith.mulf %5, %5 : vector<1x8xf32>
    %188 = vector.shape_cast %187 : vector<1x8xf32> to vector<1x1x8xf32>
    %cst_73 = arith.constant dense<0.000000e+00> : vector<1xf32>
    %189 = vector.multi_reduction <add>, %188, %cst_73 [1, 2] : vector<1x1x8xf32> to vector<1xf32>
    %190 = vector.shape_cast %189 : vector<1xf32> to vector<1x1x1xf32>
    %191 = vector.extract %190[0, 0, 0] : f32 from vector<1x1x1xf32>
    %192 = math.sqrt %191 : f32
    %cst_74 = arith.constant 9.99999974E-6 : f32
    %193 = arith.mulf %192, %cst_74 : f32
    %194 = arith.addf %186, %193 : f32
    %195 = arith.addf %180, %194 : f32
    %196 = tpu.iota {dimensions = array<i32: 1>} : vector<1x2xi32>
    %c0_i32 = arith.constant 0 : i32
    %197 = vector.broadcast %c0_i32 : i32 to vector<1x2xi32>
    %198 = arith.cmpi eq, %196, %197 : vector<1x2xi32>
    %199 = vector.broadcast %106 : f32 to vector<1x2xf32>
    %200 = vector.broadcast %195 : f32 to vector<1x2xf32>
    %201 = arith.select %198, %199, %200 : vector<1x2xi1>, vector<1x2xf32>
    %c0_75 = arith.constant 0 : index
    %c0_76 = arith.constant 0 : index
    %202 = vector.load %arg8[%c0_75, %c0_76] : memref<1x2xf32, #tpu.memory_space<vmem>>, vector<1x2xf32>
    tpu.vector_store %arg8[%c0_75, %c0_76], %201 {strides = array<i32>} : memref<1x2xf32, #tpu.memory_space<vmem>>, vector<1x2xf32>,
    return
  }
}

</mosaic_0001>

<bundles_post_ra>
// kernel: model_wrapper_forward.1
= control target key start
LH: loop header
LB: loop body
LE: loop exit
PB: predicated region body
PF: predicated region fallthrough
CT: control target
= control target key end

     0   :  { %vm50_vm0 = vcmask 130048   ;;  %v934_v8 = vmov 0.0   ;;  %vm116_vm1 = vcmask 261120   ;;  %s935_s29 = smov 96   ;;  %vm476_vm2 = vcmask 64512   ;;  %s1500_s3 = inlined_call_operand.vmem [shape: f32[16,32], index: 3, kind: input, shape index: {}]   ;;  %s1501_s0 = inlined_call_operand.vmem [shape: f32[64,16], index: 0, kind: input, shape index: {}]   ;;  %s1502_s4 = inlined_call_operand.vmem [shape: f32[32,32], index: 4, kind: input, shape index: {}]   ;;  %s1503_s6 = inlined_call_operand.vmem [shape: f32[1,40], index: 6, kind: input, shape index: {}]   ;;  %s1504_s5 = inlined_call_operand.vmem [shape: f32[32,8], index: 5, kind: input, shape index: {}]   ;;  %s1505_s1 = inlined_call_operand.vmem [shape: f32[64,8], index: 1, kind: input, shape index: {}]   ;;  %s1506_s2 = inlined_call_operand.vmem [shape: f32[64,8], index: 2, kind: input, shape index: {}]   ;;  %s1507_s7 = inlined_call_operand.vmem [shape: f32[64,40], index: 7, kind: output, shape index: {0}]   ;;  %s1508_s8 = inlined_call_operand.vmem [shape: f32[1,2], index: 8, kind: output, shape index: {1}]  }
   0x1   :  { %v985_v0 = vld [vmem:[%s1500_s3 + $0x8] sm:$0xff]  ;;  %v990_v1 = vld [vmem:[%s1500_s3] sm:$0xff]  ;;  %v46_v2 = vld [vmem:[%s1501_s0 + $0x38] sm:$0xff]  ;;  %vm688_vm3 = vcmask 253952   ;;  %vm427_vm4 = vcmask 326656   ;;  %vm791_vm5 = vcmask 57344  }
   0x2   :  { %874 = vmatpush.msra.mxu2 %v985_v0  ;;  %v999_v3 = vld [vmem:[%s1502_s4 + $0x18] sm:$0xff]  ;;  %89 = vmatpush.msra.mxu0 %v985_v0  ;;  %v39_v4 = vld [vmem:[%s1501_s0] sm:$0xff]  ;;  %v1013_v5 = vld [vmem:[%s1502_s4 + $0x10] sm:$0xff] }
   0x3   :  { %187 = vmatpush.msra.mxu3 %v999_v3  ;;  %215 = vmatpush.msra.mxu1 %v999_v3  ;;  %v1021_v6 = vld [vmem:[%s1502_s4 + $0x8] sm:$0xff]  ;;  %v1029_v7 = vld [vmem:[%s1502_s4] sm:$0xff]  ;;  %v41_v18 = vld [vmem:[%s1501_s0 + $0x10] sm:$0xff]  ;;  %s936_s4 = smov 32  }
   0x4   :  { %875 = vmatpush.msra.mxu2 %v990_v1  ;;  %90 = vmatpush.msra.mxu0 %v990_v1  ;;  %v40_v9 = vld [vmem:[%s1501_s0 + $0x8] sm:$0xff]  ;;  %v1061_v12 = vld [vmem:[%s1503_s6] ss:$0 sm:$0xff]  ;;  %v42_v27 = vld [vmem:[%s1501_s0 + $0x18] sm:$0xff] }
   0x5   :  { %858 = vmatmul.msk.f32.vlgmr.msra.gmra.mxu2 %vm50_vm0, %v46_v2  ;;  %851 = vmatmul.msk.f32.vlgmr.msra.gmra.mxu0 %vm50_vm0, %v39_v4  ;;  %v43_v36 = vld [vmem:[%s1501_s0 + $0x20] sm:$0xff]  ;;  %v1107_v45 = vld [vmem:[%s1504_s5 + $0x18] sm:$0xff]  ;;  %v1112_v46 = vld [vmem:[%s1504_s5 + $0x10] sm:$0xff] }
   0x6   :  { %132 = vmatpush.msrb.mxu2 %v999_v3  ;;  %188 = vmatpush.msra.mxu3 %v1013_v5  ;;  %v44_v47 = vld [vmem:[%s1501_s0 + $0x28] sm:$0xff]  ;;  %v1129_v49 = vld [vmem:[%s1504_s5] sm:$0xff]  ;;  %v45_v58 = vld [vmem:[%s1501_s0 + $0x30] sm:$0xff] }
   0x7   :  { %216 = vmatpush.msra.mxu1 %v1013_v5  ;;  %340 = vrot.lane.b32.xlu0 %v1061_v12, %s935_s29  ;;  %v1122_v48 = vld [vmem:[%s1504_s5 + $0x8] sm:$0xff] }
   0x8   :  { %133 = vmatpush.msrb.mxu2 %v1013_v5  ;;  %189 = vmatpush.msra.mxu3 %v1021_v6 }
   0x9   :  { %217 = vmatpush.msra.mxu1 %v1021_v6 }
   0xa   :  { %134 = vmatpush.msrb.mxu2 %v1021_v6  ;;  %190 = vmatpush.msra.mxu3 %v1029_v7 }
   0xb   :  { %218 = vmatpush.msra.mxu1 %v1029_v7 }
   0xc   :  { %271 = vmatpush.msrb.mxu3 %v999_v3  ;;  %135 = vmatpush.msrb.mxu2 %v1029_v7 }
   0xd   :  { %299 = vmatpush.msrb.mxu1 %v999_v3  ;;  %136 = vmatmul.f32.vlgmr.msrb.gmra.mxu2 %v934_v8 }
   0xe   :  { %272 = vmatpush.msrb.mxu3 %v1013_v5  ;;  %159 = vmatpush.msra.mxu2 %v999_v3 }
   0xf   :  { %300 = vmatpush.msrb.mxu1 %v1013_v5  ;;  %852 = vmatmul.msk.f32.gmra.mxu0 %vm50_vm0, %v40_v9  ;;  %v583_v9 = vand.u32 2147483647, %v990_v1 }
  0x10   :  { %273 = vmatpush.msrb.mxu3 %v1021_v6  ;;  %160 = vmatpush.msra.mxu2 %v1013_v5 }
  0x11   :  { %301 = vmatpush.msrb.mxu1 %v1021_v6 }
  0x12   :  { %274 = vmatpush.msrb.mxu3 %v1029_v7  ;;  %161 = vmatpush.msra.mxu2 %v1021_v6 }
  0x13   :  { %302 = vmatpush.msrb.mxu1 %v1029_v7 }
  0x14   :  { %162 = vmatpush.msra.mxu2 %v1029_v7 }
  0x16   :  { %243 = vmatpush.msrb.mxu2 %v999_v3 }
  0x17   :  { %853 = vmatmul.msk.f32.gmra.mxu0 %vm50_vm0, %v41_v18 }
  0x18   :  { %244 = vmatpush.msrb.mxu2 %v1013_v5 }
  0x1a   :  { %245 = vmatpush.msrb.mxu2 %v1021_v6 }
  0x1c   :  { %246 = vmatpush.msrb.mxu2 %v1029_v7 }
  0x1f   :  { %854 = vmatmul.msk.f32.gmra.mxu0 %vm50_vm0, %v42_v27 }
  0x27   :  { %855 = vmatmul.msk.f32.gmra.mxu0 %vm50_vm0, %v43_v36 }
  0x2f   :  { %856 = vmatmul.msk.f32.gmra.mxu0 %vm50_vm0, %v44_v47 }
  0x37   :  { %857 = vmatmul.msk.f32.gmra.mxu0 %vm50_vm0, %v45_v58 }
  0x82   :  { %v92_v11 = vpop.f32.mrf.mxu0 }
  0x83   :  { %v93_v13 = vadd.f32 %v1061_v12, %v92_v11  ;;  %v584_v11 = vand.u32 2147483647, %v985_v0 }
  0x85   :  { %v586_v18 = vsel %vm116_vm1, %v584_v11, 0.0  ;;  %v436_v11 = vld [vmem:[%s1506_s2] sm:$0xff] }
  0x88   :  { %v1056_v10 = vpop.f32.mrf.mxu2 }
  0x8c   :  { %v95_v19 = vpop.f32.mrf.mxu0 }
  0x8d   :  { %v96_v20 = vadd.f32 %v1061_v12, %v95_v19  ;;  %v650_v19 = vmul.f32 %v1029_v7, %v1029_v7 }
  0x90   :  { %v137_v14 = vpop.f32.mrf.mxu2 }
  0x91   :  { %v140_v15 = vadd.f32 %v137_v14, %v93_v13  ;;  %v749_v13 = vmul.f32 %v1129_v49, %v1129_v49  ;;  %v598_v14 = vmul.f32 %v990_v1, %v990_v1 }
  0x93   :  { %v141_v16 = vmax.f32 %v140_v15, 0.0  ;;  %v599_v15 = vmul.f32 %v985_v0, %v985_v0  ;;  %v600_v1 = vsel %vm116_vm1, %v598_v14, 0.0  ;;  %v652_v0 = vmul.f32 %v1013_v5, %v1013_v5  ;;  %v445_v14 = vld [vmem:[%s1505_s1 + $0x8] sm:$0xff] }
  0x94   :  { %v98_v28 = vpop.f32.mrf.mxu0  ;;  %v753_v27 = vsel %vm476_vm2, %v749_v13, 0.0 }
  0x95   :  { %v1064_v17 = vmul.f32 0.2, %v141_v16  ;;  %v99_v29 = vadd.f32 %v1061_v12, %v98_v28  ;;  %v585_v16 = vsel %vm116_vm1, %v583_v9, 0.0 }
  0x97   :  { %859 = vmatmul.msk.f32.vlgmr.msra.gmra.mxu2 %vm116_vm1, %v1064_v17  ;;  %v168_v24 = vmul.f32 0.8, %v1064_v17 }
  0x98   :  { %327 = vmatpush.msra.mxu2 %v999_v3 }
  0x9a   :  { %328 = vmatpush.msra.mxu2 %v1013_v5 }
  0x9c   :  { %329 = vmatpush.msra.mxu2 %v1021_v6  ;;  %v101_v37 = vpop.f32.mrf.mxu0 }
  0x9d   :  { %v102_v38 = vadd.f32 %v1061_v12, %v101_v37 }
  0x9e   :  { %330 = vmatpush.msra.mxu2 %v1029_v7 }
  0xa4   :  { %v104_v50 = vpop.f32.mrf.mxu0 }
  0xa5   :  { %v105_v51 = vadd.f32 %v1061_v12, %v104_v50 }
  0xac   :  { %v107_v59 = vpop.f32.mrf.mxu0 }
  0xad   :  { %v108_v60 = vadd.f32 %v1061_v12, %v107_v59 }
 0x11a   :  { %v164_v21 = vpop.f32.mrf.mxu2 }
 0x11b   :  { %v167_v22 = vadd.f32 %v164_v21, %v96_v20  ;;  %v651_v20 = vmul.f32 %v1021_v6, %v1021_v6  ;;  %v750_v21 = vmul.f32 %v1122_v48, %v1122_v48 }
 0x11d   :  { %v169_v23 = vmax.f32 %v167_v22, 0.0  ;;  %v587_v22 = vadd.f32 %v586_v18, %v585_v16  ;;  %v754_v28 = vsel %vm476_vm2, %v750_v21, 0.0 }
 0x11f   :  { %v170_v25 = vmul.f32 0.2, %v169_v23  ;;  %588 = vadd.xlane.f32.xlu2 %v587_v22  ;;  %v601_v23 = vsel %vm116_vm1, %v599_v15, 0.0 }
 0x121   :  { %v1078_v26 = vadd.f32 %v170_v25, %v168_v24  ;;  %v654_v24 = vsel %vm116_vm1, %v650_v19, 0.0  ;;  %v655_v25 = vsel %vm116_vm1, %v651_v20, 0.0  ;;  %v437_v19 = vld [vmem:[%s1506_s2 + $0x8] sm:$0xff] }
 0x123   :  { %860 = vmatmul.msk.f32.vlgmr.msra.gmra.mxu3 %vm116_vm1, %v1078_v26  ;;  %v196_v33 = vmul.f32 0.8, %v1078_v26 }
 0x124   :  { %876 = vmatpush.msra.mxu3 %v1107_v45 }
 0x126   :  { %877 = vmatpush.msra.mxu3 %v1112_v46 }
 0x128   :  { %878 = vmatpush.msra.mxu3 %v1122_v48 }
 0x12a   :  { %879 = vmatpush.msra.mxu3 %v1129_v49 }
 0x1a6   :  { %v192_v30 = vpop.f32.mrf.mxu3 }
 0x1a7   :  { %v195_v31 = vadd.f32 %v192_v30, %v99_v29  ;;  %v755_v29 = vadd.f32 %v754_v28, %v753_v27  ;;  %v602_v30 = vadd.f32 %v601_v23, %v600_v1  ;;  %v446_v23 = vld [vmem:[%s1505_s1 + $0x10] sm:$0xff] }
 0x1a9   :  { %v197_v32 = vmax.f32 %v195_v31, 0.0  ;;  %v656_v31 = vadd.f32 %v655_v25, %v654_v24  ;;  %603 = vadd.xlane.f32.xlu2 %v602_v30  ;;  %v438_v30 = vld [vmem:[%s1506_s2 + $0x10] sm:$0xff] }
 0x1ab   :  { %v198_v34 = vmul.f32 0.2, %v197_v32  ;;  %v653_v32 = vmul.f32 %v999_v3, %v999_v3 }
 0x1ad   :  { %v1088_v35 = vadd.f32 %v198_v34, %v196_v33  ;;  %v657_v33 = vsel %vm116_vm1, %v652_v0, 0.0  ;;  %v659_v36 = vsel %vm116_vm1, %v653_v32, 0.0 }
 0x1ae   :  { %v658_v34 = vadd.f32 %v657_v33, %v656_v31  ;;  %v448_v33 = vld [vmem:[%s1505_s1 + $0x20] sm:$0xff] }
 0x1af   :  { %861 = vmatmul.msk.f32.vlgmr.msra.gmra.mxu1 %vm116_vm1, %v1088_v35  ;;  %v224_v42 = vmul.f32 0.8, %v1088_v35 }
 0x1b0   :  { %358 = vmatpush.msra.mxu1 %v1107_v45  ;;  %v660_v37 = vadd.f32 %v659_v36, %v658_v34 }
 0x1b2   :  { %359 = vmatpush.msra.mxu1 %v1112_v46  ;;  %661 = vadd.xlane.f32.xlu2 %v660_v37  ;;  %v449_v37 = vld [vmem:[%s1505_s1 + $0x28] sm:$0xff] }
 0x1b4   :  { %360 = vmatpush.msra.mxu1 %v1122_v48 }
 0x1b6   :  { %361 = vmatpush.msra.mxu1 %v1129_v49 }
 0x22c   :  { %v220_v39 = vpop.f32.mrf.mxu1 }
 0x22d   :  { %v223_v40 = vadd.f32 %v220_v39, %v102_v38  ;;  %v1191_v38 = vld [vmem:[%s1503_s6] sm:$0x1] }
 0x22e   :  { %v700_v39 = vmul.f32 %v1191_v38, %v1191_v38 }
 0x22f   :  { %v225_v41 = vmax.f32 %v223_v40, 0.0  ;;  %v751_v40 = vmul.f32 %v1112_v46, %v1112_v46 }
 0x231   :  { %v226_v43 = vmul.f32 0.2, %v225_v41  ;;  %v701_v41 = vsel %vm688_vm3, %v700_v39, 0.0 }
 0x232   :  { %702 = vadd.xlane.f32.xlu2 %v701_v41 }
 0x233   :  { %v1098_v44 = vadd.f32 %v226_v43, %v224_v42  ;;  %v752_v42 = vmul.f32 %v1107_v45, %v1107_v45  ;;  %v756_v43 = vsel %vm476_vm2, %v751_v40, 0.0  ;;  %v440_v40 = vld [vmem:[%s1506_s2 + $0x20] sm:$0xff] }
 0x234   :  { %v757_v47 = vadd.f32 %v756_v43, %v755_v29 }
 0x235   :  { %862 = vmatmul.msk.f32.vlgmr.msrb.gmra.mxu2 %vm116_vm1, %v1098_v44  ;;  %v252_v55 = vmul.f32 0.8, %v1098_v44  ;;  %v758_v50 = vsel %vm476_vm2, %v752_v42, 0.0  ;;  %v447_v42 = vld [vmem:[%s1505_s1 + $0x18] sm:$0xff] }
 0x2b8   :  { %v248_v52 = vpop.f32.mrf.mxu2 }
 0x2b9   :  { %v251_v53 = vadd.f32 %v248_v52, %v105_v51  ;;  %v759_v51 = vadd.f32 %v758_v50, %v757_v47  ;;  %v804_v52 = vperm.slane %v700_v39, 0 }
 0x2bb   :  { %v253_v54 = vmax.f32 %v251_v53, 0.0  ;;  %760 = vadd.xlane.f32.xlu2 %v759_v51  ;;  %v110_v53 = vpop.f32.mrf.mxu0  ;;  %v441_v51 = vld [vmem:[%s1506_s2 + $0x28] sm:$0xff] }
 0x2bd   :  { %v254_v56 = vmul.f32 0.2, %v253_v54  ;;  %v111_v54 = vadd.f32 %v1061_v12, %v110_v53 }
 0x2bf   :  { %v1138_v57 = vadd.f32 %v254_v56, %v252_v55 }
 0x2c1   :  { %863 = vmatmul.msk.f32.vlgmr.msrb.gmra.mxu3 %vm116_vm1, %v1138_v57  ;;  %v280_v2 = vmul.f32 0.8, %v1138_v57 }
 0x2c9   :  { %870 = vmatmul.msk.f32.vlgmr.msra.gmra.mxu3 %vm116_vm1, %v1138_v57 }
 0x2d3   :  { %805 = vrot.lane.b32.xlu2 %v804_v52, %s935_s29  ;;  %v439_v52 = vld [vmem:[%s1506_s2 + $0x18] sm:$0xff] }
 0x344   :  { %v276_v61 = vpop.f32.mrf.mxu3 }
 0x345   :  { %v279_v62 = vadd.f32 %v276_v61, %v108_v60 }
 0x347   :  { %v281_v63 = vmax.f32 %v279_v62, 0.0  ;;  %v1211_v62 = vpop.permute.xlu0 %340 }
 0x349   :  { %v282_v4 = vmul.f32 0.2, %v281_v63 }
 0x34b   :  { %v1150_v8 = vadd.f32 %v282_v4, %v280_v2  ;;  %v444_v4 = vld [vmem:[%s1505_s1] sm:$0xff] }
 0x34c   :  { %v375_v18 = vpop.f32.mrf.mxu3 }
 0x34d   :  { %864 = vmatmul.msk.f32.vlgmr.msrb.gmra.mxu1 %vm116_vm1, %v1150_v8  ;;  %871 = vmatmul.msk.f32.gmra.mxu3 %vm116_vm1, %v1150_v8  ;;  %v308_v59 = vmul.f32 0.8, %v1150_v8  ;;  %v1247_v31 = vadd.f32 %v375_v18, %v1211_v62 }
 0x34f   :  { %v456_v39 = vsub.f32 %v1247_v31, %v448_v33  ;;  %v504_v33 = vand.u32 2147483647, %v1088_v35 }
 0x351   :  { %v464_v53 = vmul.f32 %v456_v39, %v440_v40  ;;  %v506_v39 = vand.u32 2147483647, %v1138_v57 }
 0x355   :  { %866 = vmatmul.msk.f32.vlgmr.msra.gmra.mxu1 %vm116_vm1, %v1064_v17 }
 0x35d   :  { %867 = vmatmul.msk.f32.gmra.mxu1 %vm116_vm1, %v1078_v26 }
 0x365   :  { %868 = vmatmul.msk.f32.gmra.mxu1 %vm116_vm1, %v1088_v35 }
 0x36d   :  { %869 = vmatmul.msk.f32.gmra.mxu1 %vm116_vm1, %v1098_v44 }
 0x3ca   :  { %v304_v55 = vpop.f32.mrf.mxu1 }
 0x3cb   :  { %v307_v56 = vadd.f32 %v304_v55, %v111_v54 }
 0x3cd   :  { %v309_v58 = vmax.f32 %v307_v56, 0.0 }
 0x3cf   :  { %v310_v60 = vmul.f32 0.2, %v309_v58 }
 0x3d0   :  { %v378_v28 = vpop.f32.mrf.mxu3 }
 0x3d1   :  { %v1209_v61 = vadd.f32 %v310_v60, %v308_v59  ;;  %v379_v34 = vadd.f32 %v378_v28, %v1211_v62  ;;  %v472_v59 = vmul.f32 %v464_v53, %v464_v53 }
 0x3d2   :  { %v363_v63 = vpop.f32.mrf.mxu1 }
 0x3d3   :  { %v364_v2 = vadd.f32 %v363_v63, %v1211_v62  ;;  %865 = vmatmul.msk.f32.vlgmr.msra.gmra.mxu2 %vm116_vm1, %v1209_v61  ;;  %872 = vmatmul.msk.f32.gmra.mxu3 %vm116_vm1, %v1209_v61  ;;  %v457_v43 = vsub.f32 %v379_v34, %v449_v37  ;;  %v114_v37 = vadd.f32 %v1061_v12, %v1056_v10  ;;  %v729_v10 = vand.u32 2147483647, %v1122_v48 }
 0x3d4   :  { %v728_v12 = vand.u32 2147483647, %v1129_v49  ;;  %v538_v49 = vmul.f32 %v1098_v44, %v1098_v44 }
 0x3d5   :  { %395 = vrot.lane.b32.xlu2 %v364_v2, %s936_s4  ;;  %v452_v9 = vsub.f32 %v364_v2, %v444_v4  ;;  %v465_v55 = vmul.f32 %v457_v43, %v441_v51 }
 0x3d7   :  { %v460_v15 = vmul.f32 %v452_v9, %v436_v11  ;;  %v473_v2 = vmul.f32 %v465_v55, %v465_v55  ;;  %v1274_v9 = vpop.xlane.xlu2 %588 }
 0x3d9   :  { %v468_v21 = vmul.f32 %v460_v15, %v460_v15  ;;  %v486_v15 = vsel %vm476_vm2, %v473_v2, 0.0  ;;  %v336_v2 = vmul.f32 0.8, %v1209_v61 }
 0x3da   :  { %v366_v13 = vpop.f32.mrf.mxu1 }
 0x3db   :  { %v1229_v16 = vadd.f32 %v366_v13, %v1211_v62  ;;  %v477_v24 = vsel %vm476_vm2, %v468_v21, 0.0  ;;  %v484_v13 = vsel %vm476_vm2, %v472_v59, 0.0 }
 0x3dd   :  { %v453_v20 = vsub.f32 %v1229_v16, %v445_v14 }
 0x3df   :  { %v461_v22 = vmul.f32 %v453_v20, %v437_v19  ;;  %v1281_v19 = vpop.xlane.xlu2 %603 }
 0x3e1   :  { %v469_v1 = vmul.f32 %v461_v22, %v461_v22 }
 0x3e2   :  { %v369_v0 = vpop.f32.mrf.mxu1 }
 0x3e3   :  { %v478_v25 = vsel %vm476_vm2, %v469_v1, 0.0  ;;  %v1241_v27 = vadd.f32 %v369_v0, %v1211_v62 }
 0x3e4   :  { %v479_v29 = vadd.f32 %v478_v25, %v477_v24 }
 0x3e5   :  { %v454_v32 = vsub.f32 %v1241_v27, %v446_v23 }
 0x3e7   :  { %v462_v36 = vmul.f32 %v454_v32, %v438_v30  ;;  %v1283_v20 = vpop.xlane.xlu2 %661  ;;  %v502_v32 = vand.u32 2147483647, %v1064_v17 }
 0x3e9   :  { %v470_v47 = vmul.f32 %v462_v36, %v462_v36  ;;  %v510_v40 = vsel %vm116_vm1, %v502_v32, 0.0  ;;  %v548_v32 = vsel %vm116_vm1, %v538_v49, 0.0 }
 0x3ea   :  { %v372_v41 = vpop.f32.mrf.mxu1 }
 0x3eb   :  { %v373_v50 = vadd.f32 %v372_v41, %v1211_v62  ;;  %v480_v56 = vsel %vm476_vm2, %v470_v47, 0.0  ;;  %v513_v41 = vsel %vm116_vm1, %v504_v33, 0.0  ;;  %v535_v47 = vmul.f32 %v1064_v17, %v1064_v17 }
 0x3ec   :  { %v481_v63 = vadd.f32 %v480_v56, %v479_v29  ;;  %v503_v29 = vand.u32 2147483647, %v1078_v26  ;;  %v508_v56 = vand.u32 2147483647, %v1209_v61 }
 0x3ed   :  { %v455_v54 = vsub.f32 %v373_v50, %v447_v42  ;;  %401 = vrot.lane.b32.xlu2 %v373_v50, %s936_s4  ;;  %v536_v50 = vmul.f32 %v1078_v26, %v1078_v26 }
 0x3ee   :  { %v511_v36 = vsel %vm116_vm1, %v503_v29, 0.0 }
 0x3ef   :  { %v463_v58 = vmul.f32 %v455_v54, %v439_v52  ;;  %v1285_v21 = vpop.xlane.xlu2 %702  ;;  %v512_v43 = vadd.f32 %v511_v36, %v510_v40  ;;  %v507_v52 = vand.u32 2147483647, %v1150_v8  ;;  %v629_v40 = vand.u32 2147483647, %v1029_v7 }
 0x3f1   :  { %v471_v60 = vmul.f32 %v463_v58, %v463_v58  ;;  %v514_v54 = vadd.f32 %v513_v41, %v512_v43  ;;  %v517_v58 = vsel %vm116_vm1, %v506_v39, 0.0  ;;  %v519_v48 = vsel %vm116_vm1, %v507_v52, 0.0 }
 0x3f2   :  { %v541_v39 = vmul.f32 %v1209_v61, %v1209_v61  ;;  %v630_v41 = vand.u32 2147483647, %v1021_v6  ;;  %v631_v52 = vand.u32 2147483647, %v1013_v5  ;;  %v687_v5 = vand.u32 2147483647, %v1191_v38 }
 0x3f3   :  { %v482_v4 = vsel %vm476_vm2, %v471_v60, 0.0  ;;  %v543_v60 = vsel %vm116_vm1, %v535_v47, 0.0  ;;  %v450_v38 = vld [vmem:[%s1505_s1 + $0x30] sm:$0xff] }
 0x3f4   :  { %v483_v11 = vadd.f32 %v482_v4, %v481_v63  ;;  %v544_v63 = vsel %vm116_vm1, %v536_v50, 0.0 }
 0x3f5   :  { %405 = vrot.lane.b32.xlu2 %v379_v34, %s936_s4  ;;  %v505_v34 = vand.u32 2147483647, %v1098_v44  ;;  %v545_v29 = vadd.f32 %v544_v63, %v543_v60  ;;  %v730_v63 = vand.u32 2147483647, %v1112_v46 }
 0x3f6   :  { %v485_v14 = vadd.f32 %v484_v13, %v483_v11  ;;  %v539_v13 = vmul.f32 %v1138_v57, %v1138_v57 }
 0x3f7   :  { %v1287_v22 = vpop.xlane.xlu2 %760  ;;  %v515_v53 = vsel %vm116_vm1, %v505_v34, 0.0 }
 0x3f8   :  { %v1279_v18 = vadd.f32 %v486_v15, %v485_v14  ;;  %v516_v59 = vadd.f32 %v515_v53, %v514_v54  ;;  %v732_v14 = vsel %vm476_vm2, %v728_v12, 0.0  ;;  %v733_v15 = vsel %vm476_vm2, %v729_v10, 0.0 }
 0x3f9   :  { %v550_v36 = vsel %vm116_vm1, %v539_v13, 0.0  ;;  %v633_v53 = vsel %vm116_vm1, %v629_v40, 0.0  ;;  %v634_v10 = vsel %vm116_vm1, %v630_v41, 0.0  ;;  %v787_v13 = vperm.slane %v687_v5, 0 }
 0x3fa   :  { %v518_v11 = vadd.f32 %v517_v58, %v516_v59  ;;  %v635_v54 = vadd.f32 %v634_v10, %v633_v53 }
 0x3ff   :  { %v1289_v1 = vpop.permute.xlu2 %805 }
 0x42f   :  { %v396_v0 = vpop.permute.xlu2 %395 }
 0x430   :  { %v419_v23 = vsel %vm116_vm1, %v1064_v17, %v396_v0  ;;  %v537_v17 = vmul.f32 %v1088_v35, %v1088_v35 }
 0x431   :  { %428 = vst.msk [vmem:[%s1507_s7] sm:$0xff] %vm427_vm4, %v419_v23  ;;  %v521_v23 = vsel %vm116_vm1, %v508_v56, 0.0  ;;  %v636_v56 = vsel %vm116_vm1, %v631_v52, 0.0 }
 0x447   :  { %v402_v24 = vpop.permute.xlu2 %401 }
 0x448   :  { %v422_v25 = vsel %vm116_vm1, %v1098_v44, %v402_v24  ;;  %v546_v24 = vsel %vm116_vm1, %v537_v17, 0.0  ;;  %v637_v17 = vadd.f32 %v636_v56, %v635_v54 }
 0x449   :  { %431 = vst.msk [vmem:[%s1507_s7 + $0x18] sm:$0xff] %vm427_vm4, %v422_v25  ;;  %v734_v25 = vadd.f32 %v733_v15, %v732_v14  ;;  %v547_v34 = vadd.f32 %v546_v24, %v545_v29  ;;  %v442_v15 = vld [vmem:[%s1506_s2 + $0x30] sm:$0xff]  ;;  %v443_v29 = vld [vmem:[%s1506_s2 + $0x38] sm:$0xff] }
 0x44b   :  { %v549_v43 = vadd.f32 %v548_v32, %v547_v34 }
 0x44d   :  { %v551_v50 = vadd.f32 %v550_v36, %v549_v43 }
 0x44f   :  { %v406_v28 = vpop.permute.xlu2 %405 }
 0x450   :  { %v424_v30 = vsel %vm116_vm1, %v1150_v8, %v406_v28  ;;  %v520_v28 = vadd.f32 %v519_v48, %v518_v11  ;;  %v735_v48 = vsel %vm476_vm2, %v730_v63, 0.0 }
 0x451   :  { %433 = vst.msk [vmem:[%s1507_s7 + $0x28] sm:$0xff] %vm427_vm4, %v424_v30  ;;  %v540_v30 = vmul.f32 %v1150_v8, %v1150_v8 }
 0x452   :  { %v522_v33 = vadd.f32 %v521_v23, %v520_v28 }
 0x453   :  { %v552_v47 = vsel %vm116_vm1, %v540_v30, 0.0 }
 0x454   :  { %v553_v7 = vadd.f32 %v552_v47, %v551_v50 }
 0x456   :  { %v332_v42 = vpop.f32.mrf.mxu2  ;;  %v381_v46 = vpop.f32.mrf.mxu3 }
 0x457   :  { %v335_v51 = vadd.f32 %v332_v42, %v114_v37 }
 0x459   :  { %v337_v55 = vmax.f32 %v335_v51, 0.0  ;;  %v554_v51 = vsel %vm116_vm1, %v541_v39, 0.0 }
 0x45a   :  { %v555_v12 = vadd.f32 %v554_v51, %v553_v7 }
 0x45b   :  { %v338_v4 = vmul.f32 0.2, %v337_v55  ;;  %v632_v55 = vand.u32 2147483647, %v999_v3  ;;  %v736_v3 = vadd.f32 %v735_v48, %v734_v25 }
 0x45d   :  { %v1341_v0 = vadd.f32 %v338_v4, %v336_v2  ;;  %v638_v59 = vsel %vm116_vm1, %v632_v55, 0.0  ;;  %v689_v2 = vsel %vm688_vm3, %v687_v5, 0.0  ;;  %v731_v4 = vand.u32 2147483647, %v1107_v45 }
 0x45e   :  { %v639_v60 = vadd.f32 %v638_v59, %v637_v17  ;;  %v382_v45 = vadd.f32 %v381_v46, %v1211_v62  ;;  %v605_v46 = vrot.slane %v1281_v19, 4  ;;  %vm841_vm3 = vcmask 8192  }
 0x45f   :  { %873 = vmatmul.msk.f32.gmra.mxu3 %vm116_vm1, %v1341_v0  ;;  %v509_v44 = vand.u32 2147483647, %v1341_v0  ;;  %v542_v8 = vmul.f32 %v1341_v0, %v1341_v0  ;;  %v737_v49 = vsel %vm476_vm2, %v731_v4, 0.0 }
 0x460   :  { %v738_v11 = vadd.f32 %v737_v49, %v736_v3  ;;  %v458_v14 = vsub.f32 %v382_v45, %v450_v38 }
 0x461   :  { %v523_v37 = vsel %vm116_vm1, %v509_v44, 0.0  ;;  %v556_v6 = vsel %vm116_vm1, %v542_v8, 0.0  ;;  %v808_v8 = vsel %vm791_vm5, %v1289_v1, 0.0 }
 0x462   :  { %v524_v42 = vadd.f32 %v523_v37, %v522_v33  ;;  %v557_v58 = vadd.f32 %v556_v6, %v555_v12  ;;  %v466_v23 = vmul.f32 %v458_v14, %v442_v15  ;;  %v606_v14 = vadd.f32 %v605_v46, %v1281_v19 }
 0x464   :  { %525 = vadd.xlane.f32.xlu1 %v524_v42  ;;  %v474_v25 = vmul.f32 %v466_v23, %v466_v23 }
 0x466   :  { %v488_v32 = vsel %vm476_vm2, %v474_v25, 0.0 }
 0x467   :  { %v489_v36 = vadd.f32 %v488_v32, %v1279_v18 }
 0x46c   :  { %558 = vadd.xlane.f32.xlu1 %v557_v58 }
 0x474   :  { %640 = vadd.xlane.f32.xlu1 %v639_v60 }
 0x47c   :  { %690 = vadd.xlane.f32.xlu1 %v689_v2 }
 0x484   :  { %739 = vadd.xlane.f32.xlu1 %v738_v11 }
 0x49d   :  { %788 = vrot.lane.b32.xlu1 %v787_v13, %s935_s29  ;;  %v590_v13 = vrot.slane %v1274_v9, 4 }
 0x4a5   :  { %397 = vrot.lane.b32.xlu1 %v1229_v16, %s936_s4 }
 0x4ad   :  { %403 = vrot.lane.b32.xlu1 %v1247_v31, %s936_s4  ;;  %v451_v31 = vld [vmem:[%s1505_s1 + $0x38] sm:$0xff] }
 0x4b5   :  { %407 = vrot.lane.b32.xlu1 %v382_v45, %s936_s4  ;;  %v591_v45 = vadd.f32 %v590_v13, %v1274_v9 }
 0x4d7   :  { %v526_v24 = vpop.xlane.xlu1 %525 }
 0x4df   :  { %v559_v33 = vpop.xlane.xlu1 %558 }
 0x4e2   :  { %v384_v16 = vpop.f32.mrf.mxu3 }
 0x4e3   :  { %v385_v28 = vadd.f32 %v384_v16, %v1211_v62  ;;  %v607_v16 = vrot.slane %v606_v14, 2 }
 0x4e5   :  { %v459_v44 = vsub.f32 %v385_v28, %v451_v31  ;;  %v608_v9 = vadd.f32 %v607_v16, %v606_v14 }
 0x4e7   :  { %v467_v30 = vmul.f32 %v459_v44, %v443_v29  ;;  %v1397_v40 = vpop.xlane.xlu1 %640  ;;  %v609_v32 = vrot.slane %v608_v9, 1 }
 0x4e9   :  { %v475_v34 = vmul.f32 %v467_v30, %v467_v30 }
 0x4eb   :  { %v490_v37 = vsel %vm476_vm2, %v475_v34, 0.0 }
 0x4ec   :  { %v491_v39 = vadd.f32 %v490_v37, %v489_v36  ;;  %v610_v37 = vadd.f32 %v609_v32, %v608_v9 }
 0x4ee   :  { %492 = vadd.xlane.f32.xlu0 %v491_v39 }
 0x4ef   :  { %v1399_v41 = vpop.xlane.xlu1 %690 }
 0x4f7   :  { %v1401_v62 = vpop.xlane.xlu1 %739 }
 0x50f   :  { %v789_v42 = vpop.permute.xlu1 %788 }
 0x510   :  { %v792_v43 = vsel %vm791_vm5, %v789_v42, 0.0  ;;  %v642_v42 = vrot.slane %v1397_v40, 4 }
 0x511   :  { %793 = vadd.xlane.f32.xlu0 %v792_v43  ;;  %v663_v43 = vrot.slane %v1283_v20, 4 }
 0x517   :  { %v398_v47 = vpop.permute.xlu1 %397 }
 0x518   :  { %v420_v18 = vsel %vm116_vm1, %v1078_v26, %v398_v47  ;;  %v527_v26 = vrot.slane %v526_v24, 4  ;;  %v664_v47 = vadd.f32 %v663_v43, %v1283_v20 }
 0x519   :  { %429 = vst.msk [vmem:[%s1507_s7 + $0x8] sm:$0xff] %vm427_vm4, %v420_v18  ;;  %809 = vadd.xlane.f32.xlu0 %v808_v8  ;;  %v643_v8 = vadd.f32 %v642_v42, %v1397_v40 }
 0x51a   :  { %v528_v53 = vadd.f32 %v527_v26, %v526_v24  ;;  %v592_v24 = vrot.slane %v591_v45, 2 }
 0x51c   :  { %v529_v7 = vrot.slane %v528_v53, 2 }
 0x51f   :  { %v404_v50 = vpop.permute.xlu1 %403 }
 0x520   :  { %v423_v51 = vsel %vm116_vm1, %v1138_v57, %v404_v50  ;;  %v560_v57 = vrot.slane %v559_v33, 4 }
 0x521   :  { %432 = vst.msk [vmem:[%s1507_s7 + $0x20] sm:$0xff] %vm427_vm4, %v423_v51  ;;  %v644_v51 = vrot.slane %v643_v8, 2 }
 0x522   :  { %v561_v10 = vadd.f32 %v560_v57, %v559_v33 }
 0x523   :  { %v645_v57 = vadd.f32 %v644_v51, %v643_v8 }
 0x524   :  { %v562_v12 = vrot.slane %v561_v10, 2 }
 0x526   :  { %v563_v58 = vadd.f32 %v562_v12, %v561_v10 }
 0x527   :  { %v408_v1 = vpop.permute.xlu1 %407 }
 0x528   :  { %v425_v52 = vsel %vm116_vm1, %v1209_v61, %v408_v1  ;;  %v530_v61 = vadd.f32 %v529_v7, %v528_v53  ;;  %v564_v5 = vrot.slane %v563_v58, 1  ;;  %v665_v1 = vrot.slane %v664_v47, 2 }
 0x529   :  { %434 = vst.msk [vmem:[%s1507_s7 + $0x30] sm:$0xff] %vm427_vm4, %v425_v52 }
 0x52a   :  { %v531_v59 = vrot.slane %v530_v61, 1  ;;  %v565_v2 = vadd.f32 %v564_v5, %v563_v58  ;;  %v666_v10 = vadd.f32 %v665_v1, %v664_v47 }
 0x52d   :  { %399 = vrot.lane.b32.xlu0 %v1241_v27, %s936_s4  ;;  %v532_v27 = vadd.f32 %v531_v59, %v530_v61  ;;  %v704_v59 = vrot.slane %v1285_v21, 4 }
 0x52f   :  { %v705_v5 = vadd.f32 %v704_v59, %v1285_v21 }
 0x535   :  { %409 = vrot.lane.b32.xlu0 %v385_v28, %s936_s4  ;;  %v593_v28 = vadd.f32 %v592_v24, %v591_v45 }
 0x537   :  { %v594_v19 = vrot.slane %v593_v28, 1 }
 0x539   :  { %v595_v36 = vadd.f32 %v594_v19, %v593_v28  ;;  %v762_v28 = vrot.slane %v1287_v22, 4 }
 0x53b   :  { %v763_v9 = vadd.f32 %v762_v28, %v1287_v22 }
 0x53d   :  { %v764_v32 = vrot.slane %v763_v9, 2 }
 0x561   :  { %v493_v6 = vpop.xlane.xlu0 %492 }
 0x562   :  { %v494_v54 = vrot.slane %v493_v6, 4 }
 0x564   :  { %v495_v55 = vadd.f32 %v494_v54, %v493_v6  ;;  %v646_v6 = vrot.slane %v645_v57, 1  ;;  %v667_v54 = vrot.slane %v666_v10, 1 }
 0x566   :  { %v496_v56 = vrot.slane %v495_v55, 2  ;;  %v647_v20 = vadd.f32 %v646_v6, %v645_v57 }
 0x568   :  { %v497_v17 = vadd.f32 %v496_v56, %v495_v55  ;;  %v668_v56 = vadd.f32 %v667_v54, %v666_v10 }
 0x56a   :  { %v498_v60 = vrot.slane %v497_v17, 1 }
 0x56c   :  { %v499_v63 = vadd.f32 %v498_v60, %v497_v17  ;;  %v692_v17 = vrot.slane %v1399_v41, 4 }
 0x56e   :  { %880 = vpush %v499_v63  ;;  %v693_v60 = vadd.f32 %v692_v17, %v1399_v41 }
 0x56f   :  { %882 = vpush %v532_v27 }
 0x570   :  { %884 = vpush %v565_v2  ;;  %v694_v2 = vrot.slane %v693_v60, 2 }
 0x572   :  { %v695_v13 = vadd.f32 %v694_v2, %v693_v60 }
 0x574   :  { %v696_v14 = vrot.slane %v695_v13, 1 }
 0x576   :  { %v697_v21 = vadd.f32 %v696_v14, %v695_v13 }
 0x584   :  { %v1425_v4 = vpop.xlane.xlu0 %793 }
 0x585   :  { %v795_v1 = vrot.slane %v1425_v4, 4 }
 0x58c   :  { %v1427_v48 = vpop.xlane.xlu0 %809 }
 0x59f   :  { %s1429_s4 = spop %880  ;;  %v400_v3 = vpop.permute.xlu0 %399 }
 0x5a0   :  { %s1431_s13 = spop %882  ;;  %v421_v49 = vsel %vm116_vm1, %v1088_v35, %v400_v3  ;;  %v706_v3 = vrot.slane %v705_v5, 2 }
 0x5a1   :  { %s885_s14 = spop %884  ;;  %430 = vst.msk [vmem:[%s1507_s7 + $0x10] sm:$0xff] %vm427_vm4, %v421_v49 }
 0x5a2   :  { %v567_v11 = vstv %s885_s14  ;;  %v707_v45 = vadd.f32 %v706_v3, %v705_v5 }
 0x5a3   :  { %922 = vrsqrt.f32 %v567_v11  ;;  %vm575_vm6 = vcmp.eq.f32.partialorder %v567_v11, inf  ;;  %vm577_vm7 = vcmp.eq.f32.partialorder %v567_v11, 0.0 }
 0x5a7   :  { %v410_v38 = vpop.permute.xlu0 %409 }
 0x5a8   :  { %v426_v35 = vsel %vm116_vm1, %v1341_v0, %v410_v38  ;;  %v578_v0 = vand.u32 2147483648, %v567_v11 }
 0x5a9   :  { %v923_v15 = vpop.eup %922  ;;  %435 = vst.msk [vmem:[%s1507_s7 + $0x38] sm:$0xff] %vm427_vm4, %v426_v35  ;;  %s534_s7 = smul.f32 4.8828124e-08, %s1431_s13 }
 0x5aa   :  { %v569_v23 = vmul.f32 %v923_v15, %v567_v11 }
 0x5ac   :  { %v570_v31 = vmul.f32 %v923_v15, %v569_v23 }
 0x5ae   :  { %v571_v25 = vmul.f32 0.5, %v570_v31 }
 0x5b0   :  { %v572_v29 = vsub.f32 1.5, %v571_v25  ;;  %v741_v25 = vrot.slane %v1401_v62, 4 }
 0x5b2   :  { %v573_v44 = vmul.f32 %v923_v15, %v572_v29  ;;  %v708_v15 = vrot.slane %v707_v45, 1  ;;  %v742_v29 = vadd.f32 %v741_v25, %v1401_v62 }
 0x5b4   :  { %v574_v30 = vmul.f32 %v573_v44, %v567_v11  ;;  %v709_v16 = vadd.f32 %v708_v15, %v707_v45 }
 0x5b6   :  { %v576_v33 = vsel %vm575_vm6, %v567_v11, %v574_v30  ;;  %v743_v30 = vrot.slane %v742_v29, 2 }
 0x5b7   :  { %v579_v34 = vsel %vm577_vm7, %v578_v0, %v576_v33 }
 0x5b8   :  { %886 = vpush %v579_v34  ;;  %v744_v34 = vadd.f32 %v743_v30, %v742_v29 }
 0x5b9   :  { %888 = vpush %v595_v36 }
 0x5ba   :  { %890 = vpush %v610_v37  ;;  %v765_v37 = vadd.f32 %v764_v32, %v763_v9  ;;  %v745_v42 = vrot.slane %v744_v34, 1 }
 0x5bc   :  { %v766_v8 = vrot.slane %v765_v37, 1  ;;  %v746_v22 = vadd.f32 %v745_v42, %v744_v34 }
 0x5e9   :  { %s887_s17 = spop %886 }
 0x5ea   :  { %s581_s0 = smul.f32 1e-05, %s887_s17  ;;  %s1450_s18 = spop %888 }
 0x5eb   :  { %s891_s6 = spop %890  ;;  %s597_s20 = smul.f32 1.953125e-07, %s1450_s18 }
 0x5ec   :  { %s1452_s19 = sadd.f32 %s581_s0, %s534_s7  ;;  %v612_v39 = vstv %s891_s6 }
 0x5ed   :  { %924 = vrsqrt.f32 %v612_v39  ;;  %vm620_vm8 = vcmp.eq.f32.partialorder %v612_v39, inf  ;;  %v623_v55 = vand.u32 2147483648, %v612_v39  ;;  %vm622_vm9 = vcmp.eq.f32.partialorder %v612_v39, 0.0 }
 0x5f3   :  { %v925_v18 = vpop.eup %924 }
 0x5f4   :  { %v614_v50 = vmul.f32 %v925_v18, %v612_v39 }
 0x5f6   :  { %v615_v52 = vmul.f32 %v925_v18, %v614_v50  ;;  %v767_v50 = vadd.f32 %v766_v8, %v765_v37 }
 0x5f8   :  { %v616_v26 = vmul.f32 0.5, %v615_v52  ;;  %v811_v52 = vrot.slane %v1427_v48, 4 }
 0x5fa   :  { %v617_v53 = vsub.f32 1.5, %v616_v26  ;;  %v796_v26 = vadd.f32 %v795_v1, %v1425_v4  ;;  %v812_v57 = vadd.f32 %v811_v52, %v1427_v48 }
 0x5fc   :  { %v618_v7 = vmul.f32 %v925_v18, %v617_v53  ;;  %v813_v6 = vrot.slane %v812_v57, 2 }
 0x5fe   :  { %v619_v12 = vmul.f32 %v618_v7, %v612_v39  ;;  %v797_v7 = vrot.slane %v796_v26, 2 }
 0x600   :  { %v621_v61 = vsel %vm620_vm8, %v612_v39, %v619_v12 }
 0x601   :  { %v624_v40 = vsel %vm622_vm9, %v623_v55, %v621_v61  ;;  %v798_v55 = vadd.f32 %v797_v7, %v796_v26 }
 0x602   :  { %892 = vpush %v624_v40  ;;  %v814_v40 = vadd.f32 %v813_v6, %v812_v57 }
 0x603   :  { %894 = vpush %v647_v20 }
 0x604   :  { %896 = vpush %v668_v56  ;;  %v799_v56 = vrot.slane %v798_v55, 1  ;;  %v815_v17 = vrot.slane %v814_v40, 1 }
 0x606   :  { %v800_v48 = vadd.f32 %v799_v56, %v798_v55  ;;  %v816_v5 = vadd.f32 %v815_v17, %v814_v40 }
 0x633   :  { %s893_s21 = spop %892 }
 0x634   :  { %s626_s22 = smul.f32 1e-05, %s893_s21  ;;  %s1459_s23 = spop %894 }
 0x635   :  { %s897_s24 = spop %896  ;;  %s649_s29 = smul.f32 9.765625e-08, %s1459_s23 }
 0x636   :  { %s1461_s25 = sadd.f32 %s626_s22, %s597_s20  ;;  %v670_v58 = vstv %s897_s24  ;;  %s501_s22 = smul.f32 0.001953125, %s1429_s4 }
 0x637   :  { %926 = vrsqrt.f32 %v670_v58  ;;  %vm678_vm10 = vcmp.eq.f32.partialorder %v670_v58, inf  ;;  %v681_v23 = vand.u32 2147483648, %v670_v58  ;;  %vm680_vm11 = vcmp.eq.f32.partialorder %v670_v58, 0.0 }
 0x638   :  { %s628_s26 = sadd.f32 %s1461_s25, %s1452_s19 }
 0x63d   :  { %v927_v63 = vpop.eup %926 }
 0x63e   :  { %v672_v27 = vmul.f32 %v927_v63, %v670_v58 }
 0x640   :  { %v673_v49 = vmul.f32 %v927_v63, %v672_v27 }
 0x642   :  { %v674_v11 = vmul.f32 0.5, %v673_v49 }
 0x644   :  { %v675_v46 = vsub.f32 1.5, %v674_v11 }
 0x646   :  { %v676_v38 = vmul.f32 %v927_v63, %v675_v46 }
 0x648   :  { %v677_v35 = vmul.f32 %v676_v38, %v670_v58 }
 0x64a   :  { %v679_v24 = vsel %vm678_vm10, %v670_v58, %v677_v35  ;;  %v835_v35 = vlaneseq }
 0x64b   :  { %v682_v41 = vsel %vm680_vm11, %v681_v23, %v679_v24  ;;  %v838_v23 = vstv %s501_s22 }
 0x64c   :  { %898 = vpush %v682_v41  ;;  %v836_v15 = vand.u32 127, %v835_v35 }
 0x64d   :  { %900 = vpush %v697_v21 }
 0x64e   :  { %902 = vpush %v709_v16  ;;  %vm837_vm2 = vcmp.eq.s32.totalorder %v836_v15, 0 }
 0x67d   :  { %s899_s27 = spop %898 }
 0x67e   :  { %s684_s28 = smul.f32 1e-05, %s899_s27  ;;  %s1470_s30 = spop %900 }
 0x67f   :  { %s903_s1 = spop %902  ;;  %s699_s10 = smul.f32 3.125e-06, %s1470_s30 }
 0x680   :  { %s685_s2 = sadd.f32 %s684_s28, %s649_s29  ;;  %v711_v31 = vstv %s903_s1 }
 0x681   :  { %928 = vrsqrt.f32 %v711_v31  ;;  %vm719_vm12 = vcmp.eq.f32.partialorder %v711_v31, inf  ;;  %v722_v47 = vand.u32 2147483648, %v711_v31  ;;  %vm721_vm13 = vcmp.eq.f32.partialorder %v711_v31, 0.0 }
 0x682   :  { %s1477_s9 = sadd.f32 %s685_s2, %s628_s26 }
 0x687   :  { %v929_v44 = vpop.eup %928 }
 0x688   :  { %v713_v19 = vmul.f32 %v929_v44, %v711_v31 }
 0x68a   :  { %v714_v0 = vmul.f32 %v929_v44, %v713_v19 }
 0x68c   :  { %v715_v33 = vmul.f32 0.5, %v714_v0 }
 0x68e   :  { %v716_v36 = vsub.f32 1.5, %v715_v33 }
 0x690   :  { %v717_v39 = vmul.f32 %v929_v44, %v716_v36 }
 0x692   :  { %v718_v43 = vmul.f32 %v717_v39, %v711_v31 }
 0x694   :  { %v720_v18 = vsel %vm719_vm12, %v711_v31, %v718_v43 }
 0x695   :  { %v723_v62 = vsel %vm721_vm13, %v722_v47, %v720_v18 }
 0x696   :  { %904 = vpush %v723_v62 }
 0x697   :  { %906 = vpush %v746_v22 }
 0x698   :  { %908 = vpush %v767_v50 }
 0x6c7   :  { %s905_s11 = spop %904 }
 0x6c8   :  { %s725_s12 = smul.f32 1e-05, %s905_s11  ;;  %s1482_s13 = spop %906 }
 0x6c9   :  { %s909_s14 = spop %908  ;;  %s748_s16 = smul.f32 3.90625e-07, %s1482_s13 }
 0x6ca   :  { %s1484_s3 = sadd.f32 %s725_s12, %s699_s10  ;;  %v769_v51 = vstv %s909_s14 }
 0x6cb   :  { %930 = vrsqrt.f32 %v769_v51  ;;  %vm777_vm14 = vcmp.eq.f32.partialorder %v769_v51, inf  ;;  %v780_v59 = vand.u32 2147483648, %v769_v51  ;;  %vm779_vm15 = vcmp.eq.f32.partialorder %v769_v51, 0.0 }
 0x6cc   :  { %s727_s15 = sadd.f32 %s1484_s3, %s1477_s9 }
 0x6d1   :  { %v931_v53 = vpop.eup %930 }
 0x6d2   :  { %v771_v10 = vmul.f32 %v931_v53, %v769_v51 }
 0x6d4   :  { %v772_v12 = vmul.f32 %v931_v53, %v771_v10 }
 0x6d6   :  { %v773_v54 = vmul.f32 0.5, %v772_v12 }
 0x6d8   :  { %v774_v61 = vsub.f32 1.5, %v773_v54 }
 0x6da   :  { %v775_v20 = vmul.f32 %v931_v53, %v774_v61 }
 0x6dc   :  { %v776_v58 = vmul.f32 %v775_v20, %v769_v51 }
 0x6de   :  { %v778_v60 = vsel %vm777_vm14, %v769_v51, %v776_v58 }
 0x6df   :  { %v781_v4 = vsel %vm779_vm15, %v780_v59, %v778_v60 }
 0x6e0   :  { %910 = vpush %v781_v4 }
 0x6e1   :  { %912 = vpush %v800_v48 }
 0x6e2   :  { %914 = vpush %v816_v5 }
 0x711   :  { %s911_s5 = spop %910 }
 0x712   :  { %s783_s7 = smul.f32 1e-05, %s911_s5  ;;  %s913_s17 = spop %912 }
 0x713   :  { %s915_s0 = spop %914  ;;  %s802_s19 = smul.f32 1.25e-05, %s913_s17 }
 0x714   :  { %s784_s18 = sadd.f32 %s783_s7, %s748_s16  ;;  %v818_v63 = vstv %s915_s0 }
 0x715   :  { %932 = vrsqrt.f32 %v818_v63  ;;  %vm826_vm0 = vcmp.eq.f32.partialorder %v818_v63, inf  ;;  %v829_v45 = vand.u32 2147483648, %v818_v63  ;;  %vm828_vm1 = vcmp.eq.f32.partialorder %v818_v63, 0.0 }
 0x716   :  { %s785_s6 = sadd.f32 %s784_s18, %s727_s15 }
 0x71b   :  { %v933_v27 = vpop.eup %932 }
 0x71c   :  { %v820_v2 = vmul.f32 %v933_v27, %v818_v63 }
 0x71e   :  { %v821_v3 = vmul.f32 %v933_v27, %v820_v2 }
 0x720   :  { %v822_v49 = vmul.f32 0.5, %v821_v3 }
 0x722   :  { %v823_v11 = vsub.f32 1.5, %v822_v49 }
 0x724   :  { %v824_v13 = vmul.f32 %v933_v27, %v823_v11 }
 0x726   :  { %v825_v46 = vmul.f32 %v824_v13, %v818_v63 }
 0x728   :  { %v827_v38 = vsel %vm826_vm0, %v818_v63, %v825_v46 }
 0x729   :  { %v830_v14 = vsel %vm828_vm1, %v829_v45, %v827_v38 }
 0x72a   :  { %916 = vpush %v830_v14 }
 0x75b   :  { %s917_s20 = spop %916 }
 0x75c   :  { %s832_s21 = smul.f32 1e-05, %s917_s20 }
 0x75e   :  { %s833_s23 = sadd.f32 %s832_s21, %s802_s19 }
 0x760   :  { %s834_s24 = sadd.f32 %s833_s23, %s785_s6 }
 0x762   :  { %v839_v24 = vstv %s834_s24 }
 0x763   :  { %v840_v41 = vsel %vm837_vm2, %v838_v23, %v839_v24 }
 0x764   :  { %842 = vst.msk [vmem:[%s1508_s8] sm:$0x1] %vm841_vm3, %v840_v41 }

</bundles_post_ra>
